<compile_context>
chip_gen: v6e
topology: v6e:2x2x1
jax: 0.10.0
libtpu: 0.0.40
codegen_flags: <defaults>
</compile_context>

<pallas_src>
import functools
import math

import jax
import jax.numpy as jnp
from jax.experimental import pallas as pl
from jax.experimental.pallas import tpu as pltpu

# FLIF neuron constants (deterministic, shared by all three layers).
ALPHA = 0.2          # fractional order (frac_order in the torch module) -- see TODO
BETA = 0.8           # membrane decay factor
THRESH = 1.0         # firing threshold


def _flif_step(current, mem):
    """Leaky integrate-and-fire update (see TODO above)."""
    mem_new = BETA * mem + current
    spk = (mem_new > THRESH).astype(jnp.float32)
    mem_new = mem_new - spk * THRESH
    return spk, mem_new


def snn2_kernel(num_steps, cur1_ref, w2_ref, b2_ref, w3_ref, b3_ref, out_ref):
    # Hoisted loads: everything below is constant across the time loop.
    cur1 = cur1_ref[...]          # (B, h1) -- layer-1 current, same every step
    w2 = w2_ref[...]
    b2 = b2_ref[...]
    w3 = w3_ref[...]
    b3 = b3_ref[...]

    B = cur1.shape[0]
    h2 = w2.shape[1]
    n_out = w3.shape[1]
    T = num_steps

    # ---- layer 1: elementwise FLIF recursion (constant input current) ------
    mem1 = jnp.zeros_like(cur1)
    spk1_steps = []
    for _ in range(T):
        spk1, mem1 = _flif_step(cur1, mem1)
        spk1_steps.append(spk1)
    spk1_all = jnp.concatenate(spk1_steps, axis=0)            # (T*B, h1)

    # ---- layer 2: ONE batched MXU matmul over all time steps ---------------
    cur2_all = jnp.dot(spk1_all, w2, preferred_element_type=jnp.float32) + b2

    mem2 = jnp.zeros((B, h2), jnp.float32)
    spk2_steps = []
    for t in range(T):
        cur2 = cur2_all[t * B:(t + 1) * B, :]
        spk2, mem2 = _flif_step(cur2, mem2)
        spk2_steps.append(spk2)
    spk2_all = jnp.concatenate(spk2_steps, axis=0)             # (T*B, h2)

    # ---- output layer: ONE batched MXU matmul over all time steps ----------
    cur3_all = jnp.dot(spk2_all, w3, preferred_element_type=jnp.float32) + b3

    mem3 = jnp.zeros((B, n_out), jnp.float32)
    out_steps = []
    for t in range(T):
        cur3 = cur3_all[t * B:(t + 1) * B, :]
        spk3, mem3 = _flif_step(cur3, mem3)
        out_steps.append(jnp.concatenate([spk3, mem3], axis=-1))

    # Single store of the whole packed trace; one HBM writeback at kernel end.
    out_ref[...] = jnp.stack(out_steps, axis=0)                # (T, B, 2*n_out)


def snn2_forward(data, params, num_steps):
    """data: (B, num_input) f32.  Returns (spikes, mems), each (T, B, num_output)."""
    w1, b1, w2, b2, w3, b3 = params
    B, _ = data.shape
    h1 = w1.shape[1]
    h2 = w2.shape[1]
    n_out = w3.shape[1]
    T = num_steps

    # Layer-1 current is identical at every time step (data is constant), so
    # compute it once here instead of T times inside the kernel.
    cur1 = jnp.dot(data, w1, preferred_element_type=jnp.float32) + b1

    full = lambda shape: pl.BlockSpec(shape, lambda i: (0,) * len(shape))

    grid_spec = pltpu.PrefetchScalarGridSpec(
        num_scalar_prefetch=0,
        grid=(1,),                                  # single invocation; time loop is in-kernel
        in_specs=[
            full((B, h1)),        # cur1 (precomputed layer-1 current)
            full((h1, h2)),       # W2
            full((1, h2)),        # b2
            full((h2, n_out)),    # W3
            full((1, n_out)),     # b3
        ],
        out_specs=full((T, B, 2 * n_out)),          # packed [spikes | mems] trace
    )

    packed = pl.pallas_call(
        functools.partial(snn2_kernel, num_steps),
        out_shape=jax.ShapeDtypeStruct((T, B, 2 * n_out), jnp.float32),
        grid_spec=grid_spec,
        compiler_params=pltpu.CompilerParams(
            dimension_semantics=("arbitrary",),
        ),
    )(cur1, w2, b2, w3, b3)

    spikes = packed[..., :n_out]
    mems = packed[..., n_out:]
    return spikes, mems


def init_linear(key, fan_in, fan_out):
    """Deterministic torch.nn.Linear-style init: U(-1/sqrt(fan_in), 1/sqrt(fan_in)).
    Weight stored as (fan_in, fan_out), bias as (1, fan_out)."""
    kw, kb = jax.random.split(key)
    bound = 1.0 / math.sqrt(fan_in)
    w = jax.random.uniform(kw, (fan_in, fan_out), jnp.float32, -bound, bound)
    b = jax.random.uniform(kb, (1, fan_out), jnp.float32, -bound, bound)
    return w, b


if __name__ == "__main__":
    # small shapes consistent with the module's forward
    batch = 2
    num_input = 16
    num_hidden1 = 32
    num_hidden2 = 32
    num_output = 8
    num_steps = 8

    key = jax.random.PRNGKey(0)
    k_data, k1, k2, k3 = jax.random.split(key, 4)

    data = jax.random.normal(k_data, (batch, num_input), jnp.float32)

    w1, b1 = init_linear(k1, num_input, num_hidden1)
    w2, b2 = init_linear(k2, num_hidden1, num_hidden2)
    w3, b3 = init_linear(k3, num_hidden2, num_output)
    params = (w1, b1, w2, b2, w3, b3)

    spikes, mems = snn2_forward(data, params, num_steps)
    jax.block_until_ready((spikes, mems))

    assert spikes.shape == (num_steps, batch, num_output)
    assert mems.shape == (num_steps, batch, num_output)
    print("KERNEL_OK")
</pallas_src>

<mosaic_0001>
module attributes {stable_mosaic.version = 11 : i64} {
  func.func @snn2_kernel(%arg0: i32, %arg1: memref<2x32xf32, #tpu.memory_space<vmem>>, %arg2: memref<32x32xf32, #tpu.memory_space<vmem>>, %arg3: memref<1x32xf32, #tpu.memory_space<vmem>>, %arg4: memref<32x8xf32, #tpu.memory_space<vmem>>, %arg5: memref<1x8xf32, #tpu.memory_space<vmem>>, %arg6: memref<8x2x16xf32, #tpu.memory_space<vmem>>) attributes {dimension_semantics = [#tpu.dimension_semantics<arbitrary>], iteration_bounds = array<i64: 1>, scalar_prefetch = 0 : i64, scratch_operands = 0 : i64, tpu.core_type = #tpu.core_type<tc>, window_params = [{pipeline_mode = #tpu.pipeline_mode<synchronous>, transform_indices = @transform_0, window_bounds = array<i64: 2, 32>}, {pipeline_mode = #tpu.pipeline_mode<synchronous>, transform_indices = @transform_1, window_bounds = array<i64: 32, 32>}, {pipeline_mode = #tpu.pipeline_mode<synchronous>, transform_indices = @transform_2, window_bounds = array<i64: 1, 32>}, {pipeline_mode = #tpu.pipeline_mode<synchronous>, transform_indices = @transform_3, window_bounds = array<i64: 32, 8>}, {pipeline_mode = #tpu.pipeline_mode<synchronous>, transform_indices = @transform_4, window_bounds = array<i64: 1, 8>}, {pipeline_mode = #tpu.pipeline_mode<synchronous>, transform_indices = @transform_5, window_bounds = array<i64: 8, 2, 16>}]} {
    %c0 = arith.constant 0 : index
    %c0_0 = arith.constant 0 : index
    %0 = vector.load %arg1[%c0, %c0_0] : memref<2x32xf32, #tpu.memory_space<vmem>>, vector<2x32xf32>
    %c0_1 = arith.constant 0 : index
    %c0_2 = arith.constant 0 : index
    %1 = vector.load %arg2[%c0_1, %c0_2] : memref<32x32xf32, #tpu.memory_space<vmem>>, vector<32x32xf32>
    %c0_3 = arith.constant 0 : index
    %c0_4 = arith.constant 0 : index
    %2 = vector.load %arg3[%c0_3, %c0_4] : memref<1x32xf32, #tpu.memory_space<vmem>>, vector<1x32xf32>
    %c0_5 = arith.constant 0 : index
    %c0_6 = arith.constant 0 : index
    %3 = vector.load %arg4[%c0_5, %c0_6] : memref<32x8xf32, #tpu.memory_space<vmem>>, vector<32x8xf32>
    %c0_7 = arith.constant 0 : index
    %c0_8 = arith.constant 0 : index
    %4 = vector.load %arg5[%c0_7, %c0_8] : memref<1x8xf32, #tpu.memory_space<vmem>>, vector<1x8xf32>
    %cst = arith.constant 0.000000e+00 : f32
    %5 = vector.broadcast %cst : f32 to vector<2x32xf32>
    %cst_9 = arith.constant 8.000000e-01 : f32
    %6 = vector.broadcast %cst_9 : f32 to vector<2x32xf32>
    %7 = arith.mulf %6, %5 : vector<2x32xf32>
    %8 = arith.addf %7, %0 : vector<2x32xf32>
    %cst_10 = arith.constant 1.000000e+00 : f32
    %9 = vector.broadcast %cst_10 : f32 to vector<2x32xf32>
    %10 = arith.cmpf ogt, %8, %9 : vector<2x32xf32>
    %11 = arith.extui %10 : vector<2x32xi1> to vector<2x32xi32>
    %12 = arith.sitofp %11 : vector<2x32xi32> to vector<2x32xf32>
    %cst_11 = arith.constant 1.000000e+00 : f32
    %13 = vector.broadcast %cst_11 : f32 to vector<2x32xf32>
    %14 = arith.mulf %12, %13 : vector<2x32xf32>
    %15 = arith.subf %8, %14 : vector<2x32xf32>
    %cst_12 = arith.constant 8.000000e-01 : f32
    %16 = vector.broadcast %cst_12 : f32 to vector<2x32xf32>
    %17 = arith.mulf %16, %15 : vector<2x32xf32>
    %18 = arith.addf %17, %0 : vector<2x32xf32>
    %cst_13 = arith.constant 1.000000e+00 : f32
    %19 = vector.broadcast %cst_13 : f32 to vector<2x32xf32>
    %20 = arith.cmpf ogt, %18, %19 : vector<2x32xf32>
    %21 = arith.extui %20 : vector<2x32xi1> to vector<2x32xi32>
    %22 = arith.sitofp %21 : vector<2x32xi32> to vector<2x32xf32>
    %cst_14 = arith.constant 1.000000e+00 : f32
    %23 = vector.broadcast %cst_14 : f32 to vector<2x32xf32>
    %24 = arith.mulf %22, %23 : vector<2x32xf32>
    %25 = arith.subf %18, %24 : vector<2x32xf32>
    %cst_15 = arith.constant 8.000000e-01 : f32
    %26 = vector.broadcast %cst_15 : f32 to vector<2x32xf32>
    %27 = arith.mulf %26, %25 : vector<2x32xf32>
    %28 = arith.addf %27, %0 : vector<2x32xf32>
    %cst_16 = arith.constant 1.000000e+00 : f32
    %29 = vector.broadcast %cst_16 : f32 to vector<2x32xf32>
    %30 = arith.cmpf ogt, %28, %29 : vector<2x32xf32>
    %31 = arith.extui %30 : vector<2x32xi1> to vector<2x32xi32>
    %32 = arith.sitofp %31 : vector<2x32xi32> to vector<2x32xf32>
    %cst_17 = arith.constant 1.000000e+00 : f32
    %33 = vector.broadcast %cst_17 : f32 to vector<2x32xf32>
    %34 = arith.mulf %32, %33 : vector<2x32xf32>
    %35 = arith.subf %28, %34 : vector<2x32xf32>
    %cst_18 = arith.constant 8.000000e-01 : f32
    %36 = vector.broadcast %cst_18 : f32 to vector<2x32xf32>
    %37 = arith.mulf %36, %35 : vector<2x32xf32>
    %38 = arith.addf %37, %0 : vector<2x32xf32>
    %cst_19 = arith.constant 1.000000e+00 : f32
    %39 = vector.broadcast %cst_19 : f32 to vector<2x32xf32>
    %40 = arith.cmpf ogt, %38, %39 : vector<2x32xf32>
    %41 = arith.extui %40 : vector<2x32xi1> to vector<2x32xi32>
    %42 = arith.sitofp %41 : vector<2x32xi32> to vector<2x32xf32>
    %cst_20 = arith.constant 1.000000e+00 : f32
    %43 = vector.broadcast %cst_20 : f32 to vector<2x32xf32>
    %44 = arith.mulf %42, %43 : vector<2x32xf32>
    %45 = arith.subf %38, %44 : vector<2x32xf32>
    %cst_21 = arith.constant 8.000000e-01 : f32
    %46 = vector.broadcast %cst_21 : f32 to vector<2x32xf32>
    %47 = arith.mulf %46, %45 : vector<2x32xf32>
    %48 = arith.addf %47, %0 : vector<2x32xf32>
    %cst_22 = arith.constant 1.000000e+00 : f32
    %49 = vector.broadcast %cst_22 : f32 to vector<2x32xf32>
    %50 = arith.cmpf ogt, %48, %49 : vector<2x32xf32>
    %51 = arith.extui %50 : vector<2x32xi1> to vector<2x32xi32>
    %52 = arith.sitofp %51 : vector<2x32xi32> to vector<2x32xf32>
    %cst_23 = arith.constant 1.000000e+00 : f32
    %53 = vector.broadcast %cst_23 : f32 to vector<2x32xf32>
    %54 = arith.mulf %52, %53 : vector<2x32xf32>
    %55 = arith.subf %48, %54 : vector<2x32xf32>
    %cst_24 = arith.constant 8.000000e-01 : f32
    %56 = vector.broadcast %cst_24 : f32 to vector<2x32xf32>
    %57 = arith.mulf %56, %55 : vector<2x32xf32>
    %58 = arith.addf %57, %0 : vector<2x32xf32>
    %cst_25 = arith.constant 1.000000e+00 : f32
    %59 = vector.broadcast %cst_25 : f32 to vector<2x32xf32>
    %60 = arith.cmpf ogt, %58, %59 : vector<2x32xf32>
    %61 = arith.extui %60 : vector<2x32xi1> to vector<2x32xi32>
    %62 = arith.sitofp %61 : vector<2x32xi32> to vector<2x32xf32>
    %cst_26 = arith.constant 1.000000e+00 : f32
    %63 = vector.broadcast %cst_26 : f32 to vector<2x32xf32>
    %64 = arith.mulf %62, %63 : vector<2x32xf32>
    %65 = arith.subf %58, %64 : vector<2x32xf32>
    %cst_27 = arith.constant 8.000000e-01 : f32
    %66 = vector.broadcast %cst_27 : f32 to vector<2x32xf32>
    %67 = arith.mulf %66, %65 : vector<2x32xf32>
    %68 = arith.addf %67, %0 : vector<2x32xf32>
    %cst_28 = arith.constant 1.000000e+00 : f32
    %69 = vector.broadcast %cst_28 : f32 to vector<2x32xf32>
    %70 = arith.cmpf ogt, %68, %69 : vector<2x32xf32>
    %71 = arith.extui %70 : vector<2x32xi1> to vector<2x32xi32>
    %72 = arith.sitofp %71 : vector<2x32xi32> to vector<2x32xf32>
    %cst_29 = arith.constant 1.000000e+00 : f32
    %73 = vector.broadcast %cst_29 : f32 to vector<2x32xf32>
    %74 = arith.mulf %72, %73 : vector<2x32xf32>
    %75 = arith.subf %68, %74 : vector<2x32xf32>
    %cst_30 = arith.constant 8.000000e-01 : f32
    %76 = vector.broadcast %cst_30 : f32 to vector<2x32xf32>
    %77 = arith.mulf %76, %75 : vector<2x32xf32>
    %78 = arith.addf %77, %0 : vector<2x32xf32>
    %cst_31 = arith.constant 1.000000e+00 : f32
    %79 = vector.broadcast %cst_31 : f32 to vector<2x32xf32>
    %80 = arith.cmpf ogt, %78, %79 : vector<2x32xf32>
    %81 = arith.extui %80 : vector<2x32xi1> to vector<2x32xi32>
    %82 = arith.sitofp %81 : vector<2x32xi32> to vector<2x32xf32>
    %83 = tpu.concatenate %12, %22, %32, %42, %52, %62, %72, %82 in 0 : vector<2x32xf32>, vector<2x32xf32>, vector<2x32xf32>, vector<2x32xf32>, vector<2x32xf32>, vector<2x32xf32>, vector<2x32xf32>, vector<2x32xf32> -> vector<16x32xf32>
    %cst_32 = arith.constant dense<0.000000e+00> : vector<16x32xf32>
    %84 = tpu.matmul %83, %1, %cst_32 {dimension_numbers = #tpu.dot_dimension_numbers<[1], [0], [0], [1], [0, 0, 1, 1], [], []>} : vector<16x32xf32>, vector<32x32xf32>, vector<16x32xf32> -> vector<16x32xf32>
    %85 = vector.broadcast %2 : vector<1x32xf32> to vector<16x32xf32>
    %86 = arith.addf %84, %85 : vector<16x32xf32>
    %cst_33 = arith.constant 0.000000e+00 : f32
    %87 = vector.broadcast %cst_33 : f32 to vector<2x32xf32>
    %88 = vector.extract_strided_slice %86 {offsets = [0, 0], sizes = [2, 32], strides = [1, 1]} : vector<16x32xf32> to vector<2x32xf32>
    %cst_34 = arith.constant 8.000000e-01 : f32
    %89 = vector.broadcast %cst_34 : f32 to vector<2x32xf32>
    %90 = arith.mulf %89, %87 : vector<2x32xf32>
    %91 = arith.addf %90, %88 : vector<2x32xf32>
    %cst_35 = arith.constant 1.000000e+00 : f32
    %92 = vector.broadcast %cst_35 : f32 to vector<2x32xf32>
    %93 = arith.cmpf ogt, %91, %92 : vector<2x32xf32>
    %94 = arith.extui %93 : vector<2x32xi1> to vector<2x32xi32>
    %95 = arith.sitofp %94 : vector<2x32xi32> to vector<2x32xf32>
    %cst_36 = arith.constant 1.000000e+00 : f32
    %96 = vector.broadcast %cst_36 : f32 to vector<2x32xf32>
    %97 = arith.mulf %95, %96 : vector<2x32xf32>
    %98 = arith.subf %91, %97 : vector<2x32xf32>
    %99 = vector.extract_strided_slice %86 {offsets = [2, 0], sizes = [2, 32], strides = [1, 1]} : vector<16x32xf32> to vector<2x32xf32>
    %cst_37 = arith.constant 8.000000e-01 : f32
    %100 = vector.broadcast %cst_37 : f32 to vector<2x32xf32>
    %101 = arith.mulf %100, %98 : vector<2x32xf32>
    %102 = arith.addf %101, %99 : vector<2x32xf32>
    %cst_38 = arith.constant 1.000000e+00 : f32
    %103 = vector.broadcast %cst_38 : f32 to vector<2x32xf32>
    %104 = arith.cmpf ogt, %102, %103 : vector<2x32xf32>
    %105 = arith.extui %104 : vector<2x32xi1> to vector<2x32xi32>
    %106 = arith.sitofp %105 : vector<2x32xi32> to vector<2x32xf32>
    %cst_39 = arith.constant 1.000000e+00 : f32
    %107 = vector.broadcast %cst_39 : f32 to vector<2x32xf32>
    %108 = arith.mulf %106, %107 : vector<2x32xf32>
    %109 = arith.subf %102, %108 : vector<2x32xf32>
    %110 = vector.extract_strided_slice %86 {offsets = [4, 0], sizes = [2, 32], strides = [1, 1]} : vector<16x32xf32> to vector<2x32xf32>
    %cst_40 = arith.constant 8.000000e-01 : f32
    %111 = vector.broadcast %cst_40 : f32 to vector<2x32xf32>
    %112 = arith.mulf %111, %109 : vector<2x32xf32>
    %113 = arith.addf %112, %110 : vector<2x32xf32>
    %cst_41 = arith.constant 1.000000e+00 : f32
    %114 = vector.broadcast %cst_41 : f32 to vector<2x32xf32>
    %115 = arith.cmpf ogt, %113, %114 : vector<2x32xf32>
    %116 = arith.extui %115 : vector<2x32xi1> to vector<2x32xi32>
    %117 = arith.sitofp %116 : vector<2x32xi32> to vector<2x32xf32>
    %cst_42 = arith.constant 1.000000e+00 : f32
    %118 = vector.broadcast %cst_42 : f32 to vector<2x32xf32>
    %119 = arith.mulf %117, %118 : vector<2x32xf32>
    %120 = arith.subf %113, %119 : vector<2x32xf32>
    %121 = vector.extract_strided_slice %86 {offsets = [6, 0], sizes = [2, 32], strides = [1, 1]} : vector<16x32xf32> to vector<2x32xf32>
    %cst_43 = arith.constant 8.000000e-01 : f32
    %122 = vector.broadcast %cst_43 : f32 to vector<2x32xf32>
    %123 = arith.mulf %122, %120 : vector<2x32xf32>
    %124 = arith.addf %123, %121 : vector<2x32xf32>
    %cst_44 = arith.constant 1.000000e+00 : f32
    %125 = vector.broadcast %cst_44 : f32 to vector<2x32xf32>
    %126 = arith.cmpf ogt, %124, %125 : vector<2x32xf32>
    %127 = arith.extui %126 : vector<2x32xi1> to vector<2x32xi32>
    %128 = arith.sitofp %127 : vector<2x32xi32> to vector<2x32xf32>
    %cst_45 = arith.constant 1.000000e+00 : f32
    %129 = vector.broadcast %cst_45 : f32 to vector<2x32xf32>
    %130 = arith.mulf %128, %129 : vector<2x32xf32>
    %131 = arith.subf %124, %130 : vector<2x32xf32>
    %132 = vector.extract_strided_slice %86 {offsets = [8, 0], sizes = [2, 32], strides = [1, 1]} : vector<16x32xf32> to vector<2x32xf32>
    %cst_46 = arith.constant 8.000000e-01 : f32
    %133 = vector.broadcast %cst_46 : f32 to vector<2x32xf32>
    %134 = arith.mulf %133, %131 : vector<2x32xf32>
    %135 = arith.addf %134, %132 : vector<2x32xf32>
    %cst_47 = arith.constant 1.000000e+00 : f32
    %136 = vector.broadcast %cst_47 : f32 to vector<2x32xf32>
    %137 = arith.cmpf ogt, %135, %136 : vector<2x32xf32>
    %138 = arith.extui %137 : vector<2x32xi1> to vector<2x32xi32>
    %139 = arith.sitofp %138 : vector<2x32xi32> to vector<2x32xf32>
    %cst_48 = arith.constant 1.000000e+00 : f32
    %140 = vector.broadcast %cst_48 : f32 to vector<2x32xf32>
    %141 = arith.mulf %139, %140 : vector<2x32xf32>
    %142 = arith.subf %135, %141 : vector<2x32xf32>
    %143 = vector.extract_strided_slice %86 {offsets = [10, 0], sizes = [2, 32], strides = [1, 1]} : vector<16x32xf32> to vector<2x32xf32>
    %cst_49 = arith.constant 8.000000e-01 : f32
    %144 = vector.broadcast %cst_49 : f32 to vector<2x32xf32>
    %145 = arith.mulf %144, %142 : vector<2x32xf32>
    %146 = arith.addf %145, %143 : vector<2x32xf32>
    %cst_50 = arith.constant 1.000000e+00 : f32
    %147 = vector.broadcast %cst_50 : f32 to vector<2x32xf32>
    %148 = arith.cmpf ogt, %146, %147 : vector<2x32xf32>
    %149 = arith.extui %148 : vector<2x32xi1> to vector<2x32xi32>
    %150 = arith.sitofp %149 : vector<2x32xi32> to vector<2x32xf32>
    %cst_51 = arith.constant 1.000000e+00 : f32
    %151 = vector.broadcast %cst_51 : f32 to vector<2x32xf32>
    %152 = arith.mulf %150, %151 : vector<2x32xf32>
    %153 = arith.subf %146, %152 : vector<2x32xf32>
    %154 = vector.extract_strided_slice %86 {offsets = [12, 0], sizes = [2, 32], strides = [1, 1]} : vector<16x32xf32> to vector<2x32xf32>
    %cst_52 = arith.constant 8.000000e-01 : f32
    %155 = vector.broadcast %cst_52 : f32 to vector<2x32xf32>
    %156 = arith.mulf %155, %153 : vector<2x32xf32>
    %157 = arith.addf %156, %154 : vector<2x32xf32>
    %cst_53 = arith.constant 1.000000e+00 : f32
    %158 = vector.broadcast %cst_53 : f32 to vector<2x32xf32>
    %159 = arith.cmpf ogt, %157, %158 : vector<2x32xf32>
    %160 = arith.extui %159 : vector<2x32xi1> to vector<2x32xi32>
    %161 = arith.sitofp %160 : vector<2x32xi32> to vector<2x32xf32>
    %cst_54 = arith.constant 1.000000e+00 : f32
    %162 = vector.broadcast %cst_54 : f32 to vector<2x32xf32>
    %163 = arith.mulf %161, %162 : vector<2x32xf32>
    %164 = arith.subf %157, %163 : vector<2x32xf32>
    %165 = vector.extract_strided_slice %86 {offsets = [14, 0], sizes = [2, 32], strides = [1, 1]} : vector<16x32xf32> to vector<2x32xf32>
    %cst_55 = arith.constant 8.000000e-01 : f32
    %166 = vector.broadcast %cst_55 : f32 to vector<2x32xf32>
    %167 = arith.mulf %166, %164 : vector<2x32xf32>
    %168 = arith.addf %167, %165 : vector<2x32xf32>
    %cst_56 = arith.constant 1.000000e+00 : f32
    %169 = vector.broadcast %cst_56 : f32 to vector<2x32xf32>
    %170 = arith.cmpf ogt, %168, %169 : vector<2x32xf32>
    %171 = arith.extui %170 : vector<2x32xi1> to vector<2x32xi32>
    %172 = arith.sitofp %171 : vector<2x32xi32> to vector<2x32xf32>
    %173 = tpu.concatenate %95, %106, %117, %128, %139, %150, %161, %172 in 0 : vector<2x32xf32>, vector<2x32xf32>, vector<2x32xf32>, vector<2x32xf32>, vector<2x32xf32>, vector<2x32xf32>, vector<2x32xf32>, vector<2x32xf32> -> vector<16x32xf32>
    %cst_57 = arith.constant dense<0.000000e+00> : vector<16x8xf32>
    %174 = tpu.matmul %173, %3, %cst_57 {dimension_numbers = #tpu.dot_dimension_numbers<[1], [0], [0], [1], [0, 0, 1, 1], [], []>} : vector<16x32xf32>, vector<32x8xf32>, vector<16x8xf32> -> vector<16x8xf32>
    %175 = vector.broadcast %4 : vector<1x8xf32> to vector<16x8xf32>
    %176 = arith.addf %174, %175 : vector<16x8xf32>
    %cst_58 = arith.constant 0.000000e+00 : f32
    %177 = vector.broadcast %cst_58 : f32 to vector<2x8xf32>
    %178 = vector.extract_strided_slice %176 {offsets = [0, 0], sizes = [2, 8], strides = [1, 1]} : vector<16x8xf32> to vector<2x8xf32>
    %cst_59 = arith.constant 8.000000e-01 : f32
    %179 = vector.broadcast %cst_59 : f32 to vector<2x8xf32>
    %180 = arith.mulf %179, %177 : vector<2x8xf32>
    %181 = arith.addf %180, %178 : vector<2x8xf32>
    %cst_60 = arith.constant 1.000000e+00 : f32
    %182 = vector.broadcast %cst_60 : f32 to vector<2x8xf32>
    %183 = arith.cmpf ogt, %181, %182 : vector<2x8xf32>
    %184 = arith.extui %183 : vector<2x8xi1> to vector<2x8xi32>
    %185 = arith.sitofp %184 : vector<2x8xi32> to vector<2x8xf32>
    %cst_61 = arith.constant 1.000000e+00 : f32
    %186 = vector.broadcast %cst_61 : f32 to vector<2x8xf32>
    %187 = arith.mulf %185, %186 : vector<2x8xf32>
    %188 = arith.subf %181, %187 : vector<2x8xf32>
    %189 = tpu.concatenate %185, %188 in 1 : vector<2x8xf32>, vector<2x8xf32> -> vector<2x16xf32>
    %190 = vector.extract_strided_slice %176 {offsets = [2, 0], sizes = [2, 8], strides = [1, 1]} : vector<16x8xf32> to vector<2x8xf32>
    %cst_62 = arith.constant 8.000000e-01 : f32
    %191 = vector.broadcast %cst_62 : f32 to vector<2x8xf32>
    %192 = arith.mulf %191, %188 : vector<2x8xf32>
    %193 = arith.addf %192, %190 : vector<2x8xf32>
    %cst_63 = arith.constant 1.000000e+00 : f32
    %194 = vector.broadcast %cst_63 : f32 to vector<2x8xf32>
    %195 = arith.cmpf ogt, %193, %194 : vector<2x8xf32>
    %196 = arith.extui %195 : vector<2x8xi1> to vector<2x8xi32>
    %197 = arith.sitofp %196 : vector<2x8xi32> to vector<2x8xf32>
    %cst_64 = arith.constant 1.000000e+00 : f32
    %198 = vector.broadcast %cst_64 : f32 to vector<2x8xf32>
    %199 = arith.mulf %197, %198 : vector<2x8xf32>
    %200 = arith.subf %193, %199 : vector<2x8xf32>
    %201 = tpu.concatenate %197, %200 in 1 : vector<2x8xf32>, vector<2x8xf32> -> vector<2x16xf32>
    %202 = vector.extract_strided_slice %176 {offsets = [4, 0], sizes = [2, 8], strides = [1, 1]} : vector<16x8xf32> to vector<2x8xf32>
    %cst_65 = arith.constant 8.000000e-01 : f32
    %203 = vector.broadcast %cst_65 : f32 to vector<2x8xf32>
    %204 = arith.mulf %203, %200 : vector<2x8xf32>
    %205 = arith.addf %204, %202 : vector<2x8xf32>
    %cst_66 = arith.constant 1.000000e+00 : f32
    %206 = vector.broadcast %cst_66 : f32 to vector<2x8xf32>
    %207 = arith.cmpf ogt, %205, %206 : vector<2x8xf32>
    %208 = arith.extui %207 : vector<2x8xi1> to vector<2x8xi32>
    %209 = arith.sitofp %208 : vector<2x8xi32> to vector<2x8xf32>
    %cst_67 = arith.constant 1.000000e+00 : f32
    %210 = vector.broadcast %cst_67 : f32 to vector<2x8xf32>
    %211 = arith.mulf %209, %210 : vector<2x8xf32>
    %212 = arith.subf %205, %211 : vector<2x8xf32>
    %213 = tpu.concatenate %209, %212 in 1 : vector<2x8xf32>, vector<2x8xf32> -> vector<2x16xf32>
    %214 = vector.extract_strided_slice %176 {offsets = [6, 0], sizes = [2, 8], strides = [1, 1]} : vector<16x8xf32> to vector<2x8xf32>
    %cst_68 = arith.constant 8.000000e-01 : f32
    %215 = vector.broadcast %cst_68 : f32 to vector<2x8xf32>
    %216 = arith.mulf %215, %212 : vector<2x8xf32>
    %217 = arith.addf %216, %214 : vector<2x8xf32>
    %cst_69 = arith.constant 1.000000e+00 : f32
    %218 = vector.broadcast %cst_69 : f32 to vector<2x8xf32>
    %219 = arith.cmpf ogt, %217, %218 : vector<2x8xf32>
    %220 = arith.extui %219 : vector<2x8xi1> to vector<2x8xi32>
    %221 = arith.sitofp %220 : vector<2x8xi32> to vector<2x8xf32>
    %cst_70 = arith.constant 1.000000e+00 : f32
    %222 = vector.broadcast %cst_70 : f32 to vector<2x8xf32>
    %223 = arith.mulf %221, %222 : vector<2x8xf32>
    %224 = arith.subf %217, %223 : vector<2x8xf32>
    %225 = tpu.concatenate %221, %224 in 1 : vector<2x8xf32>, vector<2x8xf32> -> vector<2x16xf32>
    %226 = vector.extract_strided_slice %176 {offsets = [8, 0], sizes = [2, 8], strides = [1, 1]} : vector<16x8xf32> to vector<2x8xf32>
    %cst_71 = arith.constant 8.000000e-01 : f32
    %227 = vector.broadcast %cst_71 : f32 to vector<2x8xf32>
    %228 = arith.mulf %227, %224 : vector<2x8xf32>
    %229 = arith.addf %228, %226 : vector<2x8xf32>
    %cst_72 = arith.constant 1.000000e+00 : f32
    %230 = vector.broadcast %cst_72 : f32 to vector<2x8xf32>
    %231 = arith.cmpf ogt, %229, %230 : vector<2x8xf32>
    %232 = arith.extui %231 : vector<2x8xi1> to vector<2x8xi32>
    %233 = arith.sitofp %232 : vector<2x8xi32> to vector<2x8xf32>
    %cst_73 = arith.constant 1.000000e+00 : f32
    %234 = vector.broadcast %cst_73 : f32 to vector<2x8xf32>
    %235 = arith.mulf %233, %234 : vector<2x8xf32>
    %236 = arith.subf %229, %235 : vector<2x8xf32>
    %237 = tpu.concatenate %233, %236 in 1 : vector<2x8xf32>, vector<2x8xf32> -> vector<2x16xf32>
    %238 = vector.extract_strided_slice %176 {offsets = [10, 0], sizes = [2, 8], strides = [1, 1]} : vector<16x8xf32> to vector<2x8xf32>
    %cst_74 = arith.constant 8.000000e-01 : f32
    %239 = vector.broadcast %cst_74 : f32 to vector<2x8xf32>
    %240 = arith.mulf %239, %236 : vector<2x8xf32>
    %241 = arith.addf %240, %238 : vector<2x8xf32>
    %cst_75 = arith.constant 1.000000e+00 : f32
    %242 = vector.broadcast %cst_75 : f32 to vector<2x8xf32>
    %243 = arith.cmpf ogt, %241, %242 : vector<2x8xf32>
    %244 = arith.extui %243 : vector<2x8xi1> to vector<2x8xi32>
    %245 = arith.sitofp %244 : vector<2x8xi32> to vector<2x8xf32>
    %cst_76 = arith.constant 1.000000e+00 : f32
    %246 = vector.broadcast %cst_76 : f32 to vector<2x8xf32>
    %247 = arith.mulf %245, %246 : vector<2x8xf32>
    %248 = arith.subf %241, %247 : vector<2x8xf32>
    %249 = tpu.concatenate %245, %248 in 1 : vector<2x8xf32>, vector<2x8xf32> -> vector<2x16xf32>
    %250 = vector.extract_strided_slice %176 {offsets = [12, 0], sizes = [2, 8], strides = [1, 1]} : vector<16x8xf32> to vector<2x8xf32>
    %cst_77 = arith.constant 8.000000e-01 : f32
    %251 = vector.broadcast %cst_77 : f32 to vector<2x8xf32>
    %252 = arith.mulf %251, %248 : vector<2x8xf32>
    %253 = arith.addf %252, %250 : vector<2x8xf32>
    %cst_78 = arith.constant 1.000000e+00 : f32
    %254 = vector.broadcast %cst_78 : f32 to vector<2x8xf32>
    %255 = arith.cmpf ogt, %253, %254 : vector<2x8xf32>
    %256 = arith.extui %255 : vector<2x8xi1> to vector<2x8xi32>
    %257 = arith.sitofp %256 : vector<2x8xi32> to vector<2x8xf32>
    %cst_79 = arith.constant 1.000000e+00 : f32
    %258 = vector.broadcast %cst_79 : f32 to vector<2x8xf32>
    %259 = arith.mulf %257, %258 : vector<2x8xf32>
    %260 = arith.subf %253, %259 : vector<2x8xf32>
    %261 = tpu.concatenate %257, %260 in 1 : vector<2x8xf32>, vector<2x8xf32> -> vector<2x16xf32>
    %262 = vector.extract_strided_slice %176 {offsets = [14, 0], sizes = [2, 8], strides = [1, 1]} : vector<16x8xf32> to vector<2x8xf32>
    %cst_80 = arith.constant 8.000000e-01 : f32
    %263 = vector.broadcast %cst_80 : f32 to vector<2x8xf32>
    %264 = arith.mulf %263, %260 : vector<2x8xf32>
    %265 = arith.addf %264, %262 : vector<2x8xf32>
    %cst_81 = arith.constant 1.000000e+00 : f32
    %266 = vector.broadcast %cst_81 : f32 to vector<2x8xf32>
    %267 = arith.cmpf ogt, %265, %266 : vector<2x8xf32>
    %268 = arith.extui %267 : vector<2x8xi1> to vector<2x8xi32>
    %269 = arith.sitofp %268 : vector<2x8xi32> to vector<2x8xf32>
    %cst_82 = arith.constant 1.000000e+00 : f32
    %270 = vector.broadcast %cst_82 : f32 to vector<2x8xf32>
    %271 = arith.mulf %269, %270 : vector<2x8xf32>
    %272 = arith.subf %265, %271 : vector<2x8xf32>
    %273 = tpu.concatenate %269, %272 in 1 : vector<2x8xf32>, vector<2x8xf32> -> vector<2x16xf32>
    %274 = vector.shape_cast %189 : vector<2x16xf32> to vector<1x2x16xf32>
    %275 = vector.shape_cast %201 : vector<2x16xf32> to vector<1x2x16xf32>
    %276 = vector.shape_cast %213 : vector<2x16xf32> to vector<1x2x16xf32>
    %277 = vector.shape_cast %225 : vector<2x16xf32> to vector<1x2x16xf32>
    %278 = vector.shape_cast %237 : vector<2x16xf32> to vector<1x2x16xf32>
    %279 = vector.shape_cast %249 : vector<2x16xf32> to vector<1x2x16xf32>
    %280 = vector.shape_cast %261 : vector<2x16xf32> to vector<1x2x16xf32>
    %281 = vector.shape_cast %273 : vector<2x16xf32> to vector<1x2x16xf32>
    %282 = tpu.concatenate %274, %275, %276, %277, %278, %279, %280, %281 in 0 : vector<1x2x16xf32>, vector<1x2x16xf32>, vector<1x2x16xf32>, vector<1x2x16xf32>, vector<1x2x16xf32>, vector<1x2x16xf32>, vector<1x2x16xf32>, vector<1x2x16xf32> -> vector<8x2x16xf32>
    %c0_83 = arith.constant 0 : index
    %c0_84 = arith.constant 0 : index
    %c0_85 = arith.constant 0 : index
    %283 = vector.load %arg6[%c0_83, %c0_84, %c0_85] : memref<8x2x16xf32, #tpu.memory_space<vmem>>, vector<8x2x16xf32>
    tpu.vector_store %arg6[%c0_83, %c0_84, %c0_85], %282 {strides = array<i32>} : memref<8x2x16xf32, #tpu.memory_space<vmem>>, vector<8x2x16xf32>,
    return
  }
  func.func @transform_0(%arg0: i32) -> (i32, i32) {
    %c0_i32 = arith.constant 0 : i32
    %c0_i32_0 = arith.constant 0 : i32
    %c0_i32_1 = arith.constant 0 : i32
    return %c0_i32, %c0_i32_0 : i32, i32
  }
  func.func @transform_1(%arg0: i32) -> (i32, i32) {
    %c0_i32 = arith.constant 0 : i32
    %c0_i32_0 = arith.constant 0 : i32
    %c0_i32_1 = arith.constant 0 : i32
    return %c0_i32, %c0_i32_0 : i32, i32
  }
  func.func @transform_2(%arg0: i32) -> (i32, i32) {
    %c0_i32 = arith.constant 0 : i32
    %c0_i32_0 = arith.constant 0 : i32
    %c0_i32_1 = arith.constant 0 : i32
    return %c0_i32, %c0_i32_0 : i32, i32
  }
  func.func @transform_3(%arg0: i32) -> (i32, i32) {
    %c0_i32 = arith.constant 0 : i32
    %c0_i32_0 = arith.constant 0 : i32
    %c0_i32_1 = arith.constant 0 : i32
    return %c0_i32, %c0_i32_0 : i32, i32
  }
  func.func @transform_4(%arg0: i32) -> (i32, i32) {
    %c0_i32 = arith.constant 0 : i32
    %c0_i32_0 = arith.constant 0 : i32
    %c0_i32_1 = arith.constant 0 : i32
    return %c0_i32, %c0_i32_0 : i32, i32
  }
  func.func @transform_5(%arg0: i32) -> (i32, i32, i32) {
    %c0_i32 = arith.constant 0 : i32
    %c0_i32_0 = arith.constant 0 : i32
    %c0_i32_1 = arith.constant 0 : i32
    %c0_i32_2 = arith.constant 0 : i32
    return %c0_i32, %c0_i32_0, %c0_i32_1 : i32, i32, i32
  }
}

</mosaic_0001>

<bundles_post_ra>
// kernel: tpu_custom_call.1
= control target key start
LH: loop header
LB: loop body
LE: loop exit
PB: predicated region body
PF: predicated region fallthrough
CT: control target
= control target key end

     0   :  { %s717_s0 = inlined_call_operand.vmem [shape: f32[2,32], index: 0, kind: input, shape index: {}]   ;;  %s718_s1 = inlined_call_operand.vmem [shape: f32[32,32], index: 1, kind: input, shape index: {}]   ;;  %s719_s2 = inlined_call_operand.vmem [shape: f32[1,32], index: 2, kind: input, shape index: {}]   ;;  %s720_s3 = inlined_call_operand.vmem [shape: f32[32,8], index: 3, kind: input, shape index: {}]   ;;  %s721_s4 = inlined_call_operand.vmem [shape: f32[1,8], index: 4, kind: input, shape index: {}]   ;;  %s722_s5 = inlined_call_operand.hbm [shape: f32[8,2,16], index: 5, kind: output, shape index: {}]  }
   0x1   :  { %v25_v0 = vld [vmem:[%s718_s1 + $0x18] sm:$0xff]  ;;  %v24_v1 = vld [vmem:[%s718_s1 + $0x10] sm:$0xff]  ;;  %v21_v2 = vld [vmem:[%s717_s0] sm:$0x3] }
   0x2   :  { %533 = vmatprep.subr.mxu0 %v25_v0  ;;  %v23_v3 = vld [vmem:[%s718_s1 + $0x8] sm:$0xff]  ;;  %vm33_vm0 = vcmp.gt.f32.partialorder %v21_v2, 1.0 }
   0x3   :  { %534 = vmatpush3.msra.mxu0 %v25_v0 }
   0x4   :  { %10 = vsyncpa [#allocation3], 0  ;;  %535 = vmatprep.subr.mxu0 %v24_v1  ;;  %v582_v4 = vmov 0.0   ;;  %v22_v6 = vld [vmem:[%s718_s1] sm:$0xff]  ;;  %vm96_vm3 = vcmask 1041408   ;;  %vm98_vm4 = vcmask 1043456  }
   0x5   :  { %v491_v5 = vsel %vm33_vm0, 1.0, %v582_v4  ;;  %536 = vmatpush3.msra.mxu0 %v24_v1  ;;  %vm100_vm6 = vcmask 1045504   ;;  %vm111_vm7 = vcmask 261120   ;;  %v30_v47 = vld [vmem:[%s720_s3 + $0x18] sm:$0xff]  ;;  %v29_v48 = vld [vmem:[%s720_s3 + $0x10] sm:$0xff]  ;;  %v28_v49 = vld [vmem:[%s720_s3 + $0x8] sm:$0xff] }
   0x6   :  { %v36_v7 = vsub.f32 %v21_v2, %v491_v5  ;;  %537 = vmatprep.subr.mxu0 %v23_v3  ;;  %544 = vmatprep.subr.mxu1 %v30_v47  ;;  %v27_v50 = vld [vmem:[%s720_s3] sm:$0xff]  ;;  %s583_s11 = smov 8  }
   0x7   :  { %538 = vmatpush3.msra.mxu0 %v23_v3  ;;  %545 = vmatpush3.msra.mxu1 %v30_v47  ;;  %v499_v52 = vld [vmem:[%s719_s2] ss:$0 sm:$0xff] }
   0x8   :  { %v37_v8 = vmul.f32 0.8, %v36_v7  ;;  %539 = vmatprep.subr.mxu0 %v22_v6  ;;  %546 = vmatprep.subr.mxu1 %v29_v48 }
   0x9   :  { %540 = vmatpush3.msra.mxu0 %v22_v6  ;;  %547 = vmatpush3.msra.mxu1 %v29_v48 }
   0xa   :  { %v38_v9 = vadd.f32 %v37_v8, %v21_v2  ;;  %548 = vmatprep.subr.mxu1 %v28_v49 }
   0xb   :  { %549 = vmatpush3.msra.mxu1 %v28_v49 }
   0xc   :  { %vm39_vm1 = vcmp.gt.f32.partialorder %v38_v9, 1.0  ;;  %550 = vmatprep.subr.mxu1 %v27_v50 }
   0xd   :  { %v492_v10 = vsel %vm39_vm1, 1.0, %v582_v4  ;;  %551 = vmatpush3.msra.mxu1 %v27_v50 }
   0xe   :  { %v42_v11 = vsub.f32 %v38_v9, %v492_v10  ;;  %v79_v16 = vrot.slane %v492_v10, 6 }
  0x10   :  { %v43_v12 = vmul.f32 0.8, %v42_v11  ;;  %v97_v20 = vsel %vm96_vm3, %v491_v5, %v79_v16 }
  0x12   :  { %v44_v13 = vadd.f32 %v43_v12, %v21_v2 }
  0x14   :  { %vm45_vm2 = vcmp.gt.f32.partialorder %v44_v13, 1.0 }
  0x15   :  { %v493_v14 = vsel %vm45_vm2, 1.0, %v582_v4 }
  0x16   :  { %v48_v15 = vsub.f32 %v44_v13, %v493_v14  ;;  %v82_v18 = vrot.slane %v493_v14, 4 }
  0x18   :  { %v49_v17 = vmul.f32 0.8, %v48_v15  ;;  %v99_v22 = vsel %vm98_vm4, %v97_v20, %v82_v18 }
  0x1a   :  { %v50_v19 = vadd.f32 %v49_v17, %v21_v2 }
  0x1c   :  { %vm51_vm5 = vcmp.gt.f32.partialorder %v50_v19, 1.0 }
  0x1d   :  { %v494_v21 = vsel %vm51_vm5, 1.0, %v582_v4 }
  0x1e   :  { %v54_v23 = vsub.f32 %v50_v19, %v494_v21  ;;  %v85_v24 = vrot.slane %v494_v21, 2 }
  0x20   :  { %v55_v25 = vmul.f32 0.8, %v54_v23  ;;  %v101_v26 = vsel %vm100_vm6, %v99_v22, %v85_v24 }
  0x21   :  { %541 = vmatprep.mubr.msk.f32.mxu0 %vm111_vm7, %v101_v26 }
  0x22   :  { %v56_v27 = vadd.f32 %v55_v25, %v21_v2 }
  0x24   :  { %vm57_vm8 = vcmp.gt.f32.partialorder %v56_v27, 1.0 }
  0x25   :  { %v495_v28 = vsel %vm57_vm8, 1.0, %v582_v4 }
  0x26   :  { %v60_v29 = vsub.f32 %v56_v27, %v495_v28 }
  0x28   :  { %v61_v30 = vmul.f32 0.8, %v60_v29 }
  0x2a   :  { %v62_v31 = vadd.f32 %v61_v30, %v21_v2 }
  0x2c   :  { %vm63_vm9 = vcmp.gt.f32.partialorder %v62_v31, 1.0 }
  0x2d   :  { %v496_v32 = vsel %vm63_vm9, 1.0, %v582_v4 }
  0x2e   :  { %v66_v33 = vsub.f32 %v62_v31, %v496_v32  ;;  %v88_v38 = vrot.slane %v496_v32, 6 }
  0x30   :  { %v67_v34 = vmul.f32 0.8, %v66_v33  ;;  %v102_v42 = vsel %vm96_vm3, %v495_v28, %v88_v38 }
  0x32   :  { %v68_v35 = vadd.f32 %v67_v34, %v21_v2 }
  0x34   :  { %vm69_vm10 = vcmp.gt.f32.partialorder %v68_v35, 1.0 }
  0x35   :  { %v497_v36 = vsel %vm69_vm10, 1.0, %v582_v4 }
  0x36   :  { %v72_v37 = vsub.f32 %v68_v35, %v497_v36  ;;  %v91_v40 = vrot.slane %v497_v36, 4 }
  0x38   :  { %v73_v39 = vmul.f32 0.8, %v72_v37  ;;  %v103_v44 = vsel %vm98_vm4, %v102_v42, %v91_v40 }
  0x3a   :  { %v74_v41 = vadd.f32 %v73_v39, %v21_v2 }
  0x3c   :  { %vm75_vm11 = vcmp.gt.f32.partialorder %v74_v41, 1.0  ;;  %v510_v41 = vld [vmem:[%s721_s4] ss:$0 sm:$0xff]  ;;  %s584_s4 = smov [#allocation2]  }
  0x3d   :  { %v498_v43 = vsel %vm75_vm11, 1.0, %v582_v4  ;;  %s480_s12 = sshll.u32 %s584_s4, 4  ;;  %s481_s12 = int_to_ptr.vmem [resolvable:$true] %s480_s12 }
  0x3e   :  { %v94_v45 = vrot.slane %v498_v43, 2  ;;  %s560_s13 = scalar_lea.vmem %s481_s12, 256  ;;  %p565_p1 = scmp.lt.s32.totalorder %s481_s12, %s481_s12 }
  0x3f   :  { %p561_p0 = scmp.ne.s32.totalorder %s481_s12, %s560_s13  ;;  %p566_p2 = scmp.lt.s32.totalorder %s560_s13, %s560_s13 }
  0x40   :  { %v104_v46 = vsel %vm100_vm6, %v103_v44, %v94_v45 }
  0x41   :  { %542 = vmatmul.mubr.msk.f32.vlgmr.msra.gmra.mxu0 %vm111_vm7, %v104_v46  ;;  %p567_p3 = por %p566_p2, %p565_p1 }
  0x43   :  { %p568_p4 = pnand %p567_p3, %p561_p0 }
 0x101   :  { %v543_v51 = vpop.f32.mrf.mxu0 }
 0x102   :  { %v190_v14 = vadd.f32 %v543_v51, %v499_v52 }
 0x103   :  { %v184_v53 = vpop.f32.mrf.mxu0 }
 0x104   :  { %v185_v54 = vadd.f32 %v499_v52, %v184_v53  ;;  %v231_v20 = vrot.slane %v190_v14, 2  ;;  %v239_v25 = vrot.slane %v190_v14, 4  ;;  %v247_v30 = vrot.slane %v190_v14, 6 }
 0x106   :  { %vm194_vm12 = vcmp.gt.f32.partialorder %v185_v54, 1.0  ;;  %v200_v58 = vrot.slane %v185_v54, 2  ;;  %v208_v62 = vrot.slane %v185_v54, 4  ;;  %v216_v5 = vrot.slane %v185_v54, 6 }
 0x107   :  { %v502_v55 = vsel %vm194_vm12, 1.0, %v582_v4  ;;  %vm373_vm12 = vcmask 64512  }
 0x108   :  { %v197_v56 = vsub.f32 %v185_v54, %v502_v55 }
 0x10a   :  { %v198_v57 = vmul.f32 0.8, %v197_v56 }
 0x10c   :  { %v202_v59 = vadd.f32 %v200_v58, %v198_v57 }
 0x10e   :  { %vm203_vm13 = vcmp.gt.f32.partialorder %v202_v59, 1.0 }
 0x10f   :  { %v503_v60 = vsel %vm203_vm13, 1.0, %v582_v4  ;;  %vm466_vm13 = vcmask 123904  }
 0x110   :  { %v206_v61 = vsub.f32 %v202_v59, %v503_v60  ;;  %v254_v7 = vrot.slane %v503_v60, 6 }
 0x112   :  { %v207_v63 = vmul.f32 0.8, %v206_v61  ;;  %v271_v12 = vsel %vm96_vm3, %v502_v55, %v254_v7 }
 0x114   :  { %v210_v0 = vadd.f32 %v208_v62, %v207_v63 }
 0x116   :  { %vm211_vm14 = vcmp.gt.f32.partialorder %v210_v0, 1.0 }
 0x117   :  { %v504_v1 = vsel %vm211_vm14, 1.0, %v582_v4 }
 0x118   :  { %v214_v2 = vsub.f32 %v210_v0, %v504_v1  ;;  %v257_v8 = vrot.slane %v504_v1, 4 }
 0x11a   :  { %v215_v3 = vmul.f32 0.8, %v214_v2  ;;  %v272_v13 = vsel %vm98_vm4, %v271_v12, %v257_v8 }
 0x11c   :  { %v218_v6 = vadd.f32 %v216_v5, %v215_v3 }
 0x11e   :  { %vm219_vm15 = vcmp.gt.f32.partialorder %v218_v6, 1.0 }
 0x11f   :  { %v505_v9 = vsel %vm219_vm15, 1.0, %v582_v4 }
 0x120   :  { %v222_v10 = vsub.f32 %v218_v6, %v505_v9  ;;  %v260_v11 = vrot.slane %v505_v9, 2 }
 0x122   :  { %v223_v15 = vmul.f32 0.8, %v222_v10  ;;  %v273_v16 = vsel %vm100_vm6, %v272_v13, %v260_v11 }
 0x123   :  { %552 = vmatprep.mubr.msk.f32.mxu1 %vm111_vm7, %v273_v16 }
 0x124   :  { %v224_v17 = vadd.f32 %v223_v15, %v190_v14 }
 0x126   :  { %vm225_vm0 = vcmp.gt.f32.partialorder %v224_v17, 1.0 }
 0x127   :  { %v506_v18 = vsel %vm225_vm0, 1.0, %v582_v4 }
 0x128   :  { %v228_v19 = vsub.f32 %v224_v17, %v506_v18 }
 0x12a   :  { %v229_v21 = vmul.f32 0.8, %v228_v19 }
 0x12c   :  { %v233_v22 = vadd.f32 %v231_v20, %v229_v21 }
 0x12e   :  { %vm234_vm1 = vcmp.gt.f32.partialorder %v233_v22, 1.0 }
 0x12f   :  { %v507_v23 = vsel %vm234_vm1, 1.0, %v582_v4 }
 0x130   :  { %v237_v24 = vsub.f32 %v233_v22, %v507_v23  ;;  %v263_v33 = vrot.slane %v507_v23, 6 }
 0x132   :  { %v238_v26 = vmul.f32 0.8, %v237_v24  ;;  %v274_v37 = vsel %vm96_vm3, %v506_v18, %v263_v33 }
 0x134   :  { %v241_v27 = vadd.f32 %v239_v25, %v238_v26 }
 0x136   :  { %vm242_vm2 = vcmp.gt.f32.partialorder %v241_v27, 1.0 }
 0x137   :  { %v508_v28 = vsel %vm242_vm2, 1.0, %v582_v4 }
 0x138   :  { %v245_v29 = vsub.f32 %v241_v27, %v508_v28  ;;  %v266_v34 = vrot.slane %v508_v28, 4 }
 0x13a   :  { %v246_v31 = vmul.f32 0.8, %v245_v29  ;;  %v275_v38 = vsel %vm98_vm4, %v274_v37, %v266_v34 }
 0x13c   :  { %v249_v32 = vadd.f32 %v247_v30, %v246_v31 }
 0x13e   :  { %vm250_vm5 = vcmp.gt.f32.partialorder %v249_v32, 1.0 }
 0x13f   :  { %v509_v35 = vsel %vm250_vm5, 1.0, %v582_v4 }
 0x140   :  { %v269_v36 = vrot.slane %v509_v35, 2 }
 0x142   :  { %v276_v39 = vsel %vm100_vm6, %v275_v38, %v269_v36 }
 0x143   :  { %553 = vmatmul.mubr.msk.f32.vlgmr.msra.gmra.mxu1 %vm111_vm7, %v276_v39 }
 0x203   :  { %v554_v40 = vpop.f32.mrf.mxu1 }
 0x204   :  { %v361_v61 = vadd.f32 %v554_v40, %v510_v41 }
 0x205   :  { %v355_v42 = vpop.f32.mrf.mxu1 }
 0x206   :  { %v356_v43 = vadd.f32 %v510_v41, %v355_v42  ;;  %v428_v3 = vrot.slane %v361_v61, 2  ;;  %v441_v9 = vrot.slane %v361_v61, 4  ;;  %v454_v14 = vrot.slane %v361_v61, 6 }
 0x208   :  { %vm365_vm8 = vcmp.gt.f32.partialorder %v356_v43, 1.0  ;;  %v377_v46 = vrot.slane %v356_v43, 2  ;;  %v390_v52 = vrot.slane %v356_v43, 4  ;;  %v403_v56 = vrot.slane %v356_v43, 6 }
 0x209   :  { %v513_v44 = vsel %vm365_vm8, 1.0, %v582_v4 }
 0x20a   :  { %v368_v45 = vsub.f32 %v356_v43, %v513_v44 }
 0x20c   :  { %370 = vrot.lane.b32.xlu0 %v368_v45, %s583_s11  ;;  %v375_v47 = vmul.f32 0.8, %v368_v45 }
 0x20e   :  { %v379_v48 = vadd.f32 %v377_v46, %v375_v47 }
 0x210   :  { %vm380_vm3 = vcmp.gt.f32.partialorder %v379_v48, 1.0 }
 0x211   :  { %v514_v49 = vsel %vm380_vm3, 1.0, %v582_v4 }
 0x212   :  { %v383_v50 = vsub.f32 %v379_v48, %v514_v49 }
 0x214   :  { %385 = vrot.lane.b32.xlu0 %v383_v50, %s583_s11  ;;  %v389_v51 = vmul.f32 0.8, %v383_v50 }
 0x216   :  { %v392_v53 = vadd.f32 %v390_v52, %v389_v51 }
 0x218   :  { %vm393_vm4 = vcmp.gt.f32.partialorder %v392_v53, 1.0 }
 0x219   :  { %v515_v54 = vsel %vm393_vm4, 1.0, %v582_v4 }
 0x21a   :  { %v396_v55 = vsub.f32 %v392_v53, %v515_v54 }
 0x21c   :  { %398 = vrot.lane.b32.xlu1 %v396_v55, %s583_s11  ;;  %v402_v57 = vmul.f32 0.8, %v396_v55 }
 0x21e   :  { %v405_v58 = vadd.f32 %v403_v56, %v402_v57 }
 0x220   :  { %vm406_vm6 = vcmp.gt.f32.partialorder %v405_v58, 1.0 }
 0x221   :  { %v516_v59 = vsel %vm406_vm6, 1.0, %v582_v4 }
 0x222   :  { %v409_v60 = vsub.f32 %v405_v58, %v516_v59 }
 0x224   :  { %411 = vrot.lane.b32.xlu1 %v409_v60, %s583_s11  ;;  %v415_v62 = vmul.f32 0.8, %v409_v60 }
 0x226   :  { %v416_v63 = vadd.f32 %v415_v62, %v361_v61 }
 0x228   :  { %vm417_vm7 = vcmp.gt.f32.partialorder %v416_v63, 1.0 }
 0x229   :  { %v517_v0 = vsel %vm417_vm7, 1.0, %v582_v4 }
 0x22a   :  { %v420_v1 = vsub.f32 %v416_v63, %v517_v0 }
 0x22c   :  { %422 = vrot.lane.b32.xlu0 %v420_v1, %s583_s11  ;;  %v426_v2 = vmul.f32 0.8, %v420_v1 }
 0x22e   :  { %v430_v5 = vadd.f32 %v428_v3, %v426_v2 }
 0x230   :  { %vm431_vm9 = vcmp.gt.f32.partialorder %v430_v5, 1.0 }
 0x231   :  { %v518_v6 = vsel %vm431_vm9, 1.0, %v582_v4 }
 0x232   :  { %v434_v7 = vsub.f32 %v430_v5, %v518_v6 }
 0x234   :  { %436 = vrot.lane.b32.xlu1 %v434_v7, %s583_s11  ;;  %v440_v8 = vmul.f32 0.8, %v434_v7 }
 0x236   :  { %v443_v10 = vadd.f32 %v441_v9, %v440_v8 }
 0x238   :  { %vm444_vm10 = vcmp.gt.f32.partialorder %v443_v10, 1.0 }
 0x239   :  { %v519_v11 = vsel %vm444_vm10, 1.0, %v582_v4 }
 0x23a   :  { %v447_v12 = vsub.f32 %v443_v10, %v519_v11 }
 0x23c   :  { %449 = vrot.lane.b32.xlu0 %v447_v12, %s583_s11  ;;  %v453_v13 = vmul.f32 0.8, %v447_v12 }
 0x23e   :  { %v456_v15 = vadd.f32 %v454_v14, %v453_v13 }
 0x240   :  { %vm457_vm11 = vcmp.gt.f32.partialorder %v456_v15, 1.0 }
 0x241   :  { %v520_v16 = vsel %vm457_vm11, 1.0, %v582_v4 }
 0x242   :  { %v460_v17 = vsub.f32 %v456_v15, %v520_v16 }
 0x244   :  { %462 = vrot.lane.b32.xlu1 %v460_v17, %s583_s11 }
 0x27e   :  { %v371_v18 = vpop.permute.xlu0 %370 }
 0x27f   :  { %v374_v19 = vsel %vm373_vm12, %v513_v44, %v371_v18 }
 0x280   :  { %467 = vst.msk [vmem:[#allocation2] sm:$0x3] %vm466_vm13, %v374_v19 }
 0x286   :  { %v386_v20 = vpop.permute.xlu0 %385 }
 0x287   :  { %v388_v21 = vsel %vm373_vm12, %v514_v49, %v386_v20 }
 0x288   :  { %468 = vst.msk [vmem:[#allocation2 + $0x2] sm:$0x3] %vm466_vm13, %v388_v21 }
 0x28e   :  { %v399_v22 = vpop.permute.xlu1 %398 }
 0x28f   :  { %v401_v23 = vsel %vm373_vm12, %v515_v54, %v399_v22 }
 0x290   :  { %469 = vst.msk [vmem:[#allocation2 + $0x4] sm:$0x3] %vm466_vm13, %v401_v23 }
 0x296   :  { %v412_v4 = vpop.permute.xlu1 %411 }
 0x297   :  { %v414_v24 = vsel %vm373_vm12, %v516_v59, %v412_v4 }
 0x298   :  { %470 = vst.msk [vmem:[#allocation2 + $0x6] sm:$0x3] %vm466_vm13, %v414_v24 }
 0x29e   :  { %v423_v25 = vpop.permute.xlu0 %422 }
 0x29f   :  { %v425_v26 = vsel %vm373_vm12, %v517_v0, %v423_v25 }
 0x2a0   :  { %471 = vst.msk [vmem:[#allocation2 + $0x8] sm:$0x3] %vm466_vm13, %v425_v26 }
 0x2a6   :  { %v437_v27 = vpop.permute.xlu1 %436 }
 0x2a7   :  { %v439_v28 = vsel %vm373_vm12, %v518_v6, %v437_v27 }
 0x2a8   :  { %472 = vst.msk [vmem:[#allocation2 + $0xa] sm:$0x3] %vm466_vm13, %v439_v28 }
 0x2ae   :  { %v450_v29 = vpop.permute.xlu0 %449 }
 0x2af   :  { %v452_v30 = vsel %vm373_vm12, %v519_v11, %v450_v29 }
 0x2b0   :  { %473 = vst.msk [vmem:[#allocation2 + $0xc] sm:$0x3] %vm466_vm13, %v452_v30 }
 0x2b6   :  { %v463_v31 = vpop.permute.xlu1 %462 }
 0x2b7   :  { %v465_v32 = vsel %vm373_vm12, %v520_v16, %v463_v31 }
 0x2b8   :  { %474 = vst.msk [vmem:[#allocation2 + $0xe] sm:$0x3] %vm466_vm13, %v465_v32 }
 0x2b9   :  { %571 = shalt.err (!%p568_p4)
}
 0x2ba   :  { %s585_s14 = smov 32   ;;  %s586_s15 = smov 2  }
 0x2bb   :  { %486 = dma.vmem_to_hbm [thread:$0]  %s481_s12, 256, %s722_s5, [#allocation3], %s585_s14, %s585_s14, %s586_s15  }
 0x2bc   :  { %580 = dma.done.wait [#allocation3], 256  }
 0x2bd   :  { %581 = vsyncadd [#allocation3], 4294967040 }
 0x2be   :  { %490 = vsyncpa [#allocation3], 1 }

</bundles_post_ra>
